<compile_context>
chip_gen: v7x
topology: tpu7x:2x2x1
jax: 0.10.0
libtpu: 0.0.40
codegen_flags: <defaults>
</compile_context>

<pallas_src>
import functools

import jax
import jax.numpy as jnp
from jax import lax
from jax.experimental import pallas as pl
from jax.experimental.pallas import tpu as pltpu

HIDDEN1 = 256
HIDDEN2 = 128
ROW_ALIGN = 16          # batch-tile row alignment (safe for f32 & bf16 packing)

_INV_SQRT2 = 0.7071067811865476
_SQRT_2_OVER_PI = 0.7978845608028654


def _gelu(x, approximate):
    if approximate:
        # tanh approximation -> EUP slot (otherwise idle here), frees the VALU.
        return 0.5 * x * (1.0 + jnp.tanh(_SQRT_2_OVER_PI * (x + 0.044715 * x * x * x)))
    # PyTorch nn.GELU() default: exact erf-based GELU (f32).
    return 0.5 * x * (1.0 + lax.erf(x * _INV_SQRT2))


def _mlp_kernel(x_ref, w1_ref, b1_ref, w2_ref, b2_ref, w3_ref, b3_ref, o_ref,
                *, approximate_gelu):
    w1 = w1_ref[...]
    # In-kernel cast of the activation tile to the weight dtype (bf16 fast
    # path) -- a free VPU op, avoids a wrapper-side cast/pad HBM pass.
    x = x_ref[...].astype(w1.dtype)

    # Layer 1: Linear(d_in, 256) + GELU   (Dropout = identity at inference)
    h = jnp.dot(x, w1, preferred_element_type=jnp.float32)
    h = _gelu(h + b1_ref[...], approximate_gelu)

    # Layer 2: Linear(256, 128) + GELU    (Dropout = identity at inference)
    w2 = w2_ref[...]
    h = jnp.dot(h.astype(w2.dtype), w2, preferred_element_type=jnp.float32)
    h = _gelu(h + b2_ref[...], approximate_gelu)

    # Layer 3: Linear(128, d_out)
    w3 = w3_ref[...]
    o = jnp.dot(h.astype(w3.dtype), w3, preferred_element_type=jnp.float32)
    o_ref[...] = (o + b3_ref[...]).astype(o_ref.dtype)


def _round_up(n, m):
    return -(-n // m) * m


@functools.partial(jax.jit, static_argnames=("batch_tile", "approximate_gelu"))
def music_classifier_forward(x, params, batch_tile=512, approximate_gelu=False):
    """x: [B, input_features] f32 -> [B, output_features] f32.

    Matmul dtype is inferred from the weight dtype (pass bf16 weights via
    `prepare_params` for the MXU fast path; accumulation is always f32).
    """
    if batch_tile <= 0:
        raise ValueError("batch_tile must be positive")

    w1, b1, w2, b2, w3, b3 = params
    B, d_in = x.shape
    d_out = w3.shape[1]

    # Effective batch tile: <= batch_tile, multiple of ROW_ALIGN, and (for
    # batches big enough) small enough that the grid has >= 2 steps so the
    # v7x 2-TensorCore megacore split engages.
    half = _round_up(-(-B // 2), ROW_ALIGN)
    eff_tile = max(ROW_ALIGN, min(_round_up(batch_tile, ROW_ALIGN), half))

    # Pad only the batch dim (no feature padding, no wrapper-side casts).
    B_p = _round_up(B, eff_tile)
    x_p = jnp.pad(x, ((0, B_p - B), (0, 0))) if B_p != B else x
    grid = (B_p // eff_tile,)

    # Weights/biases are small (~170 KB f32 / ~90 KB bf16) and use constant
    # index_maps -> DMA'd once, resident in VMEM across grid steps.
    full2 = lambda shape: pl.BlockSpec(shape, lambda i: (0, 0))

    kernel = functools.partial(_mlp_kernel, approximate_gelu=approximate_gelu)

    out_p = pl.pallas_call(
        kernel,
        out_shape=jax.ShapeDtypeStruct((B_p, d_out), jnp.float32),
        grid_spec=pltpu.PrefetchScalarGridSpec(
            num_scalar_prefetch=0,
            grid=grid,
            in_specs=[
                # x tile: last dim = full array dim (d_in), no lane padding.
                pl.BlockSpec((eff_tile, d_in), lambda i: (i, 0)),
                full2((d_in, HIDDEN1)),
                full2((1, HIDDEN1)),
                full2((HIDDEN1, HIDDEN2)),
                full2((1, HIDDEN2)),
                full2((HIDDEN2, d_out)),
                full2((1, d_out)),
            ],
            # Narrow (d_out-wide) direct store: masked vst, but 13x fewer
            # output HBM bytes and no post-kernel slice pass.
            out_specs=pl.BlockSpec((eff_tile, d_out), lambda i: (i, 0)),
        ),
        compiler_params=pltpu.CompilerParams(
            # Batch axis is independent -> megacore sharding when grid >= 2.
            dimension_semantics=("parallel",),
        ),
    )(x_p, w1, b1, w2, b2, w3, b3)

    return out_p[:B] if B_p != B else out_p


def init_params(key, input_features, output_features):
    """Deterministic synthetic params; weights stored as [in, out], f32."""
    ks = jax.random.split(key, 6)

    def lin(kw, kb, fan_in, fan_out):
        bound = 1.0 / jnp.sqrt(fan_in)
        w = jax.random.uniform(kw, (fan_in, fan_out), jnp.float32, -bound, bound)
        b = jax.random.uniform(kb, (1, fan_out), jnp.float32, -bound, bound)
        return w, b

    w1, b1 = lin(ks[0], ks[1], input_features, HIDDEN1)
    w2, b2 = lin(ks[2], ks[3], HIDDEN1, HIDDEN2)
    w3, b3 = lin(ks[4], ks[5], HIDDEN2, output_features)
    return (w1, b1, w2, b2, w3, b3)


def prepare_params(params, use_bf16_matmul=True):
    """One-time weight cast for the bf16 MXU fast path (biases stay f32)."""
    if not use_bf16_matmul:
        return params
    w1, b1, w2, b2, w3, b3 = params
    cast = lambda w: w.astype(jnp.bfloat16)
    return (cast(w1), b1, cast(w2), b2, cast(w3), b3)


def reference_forward(x, params):
    w1, b1, w2, b2, w3, b3 = params
    h = jax.nn.gelu(x @ w1 + b1, approximate=False)
    h = jax.nn.gelu(h @ w2 + b2, approximate=False)
    return h @ w3 + b3


if __name__ == "__main__":
    key = jax.random.PRNGKey(0)
    k_x, k_p, k_x2 = jax.random.split(key, 3)

    input_features = 32   # e.g. number of audio features
    output_features = 10  # e.g. number of genres
    params = init_params(k_p, input_features, output_features)          # f32
    params_bf16 = prepare_params(params, use_bf16_matmul=True)          # bf16 W

    # 1) Exact f32 path, small batch, exact erf GELU -> bit-level parity check.
    x_small = jax.random.normal(k_x, (8, input_features), dtype=jnp.float32)
    out = jax.block_until_ready(music_classifier_forward(x_small, params))
    ref = reference_forward(x_small, params)
    assert out.shape == (8, output_features)
    assert jnp.allclose(out, ref, atol=1e-4, rtol=1e-4), "f32 small-batch mismatch"

    # 2) Non-divisible batch, multi-step grid, bf16 MXU fast path.
    x_big = jax.random.normal(k_x2, (300, input_features), dtype=jnp.float32)
    out_bf16 = jax.block_until_ready(music_classifier_forward(x_big, params_bf16))
    ref_big = reference_forward(x_big, params)
    assert out_bf16.shape == (300, output_features)
    assert jnp.allclose(out_bf16, ref_big, atol=5e-2, rtol=5e-2), "bf16 path mismatch"

    # 3) bf16 + tanh-approx GELU (EUP) fast path.
    out_fast = jax.block_until_ready(
        music_classifier_forward(x_big, params_bf16, approximate_gelu=True))
    assert out_fast.shape == (300, output_features)
    assert jnp.allclose(out_fast, ref_big, atol=5e-2, rtol=5e-2), "approx-GELU mismatch"

    print("KERNEL_OK")
</pallas_src>

<mosaic_0001>
module attributes {stable_mosaic.version = 11 : i64} {
  func.func @_mlp_kernel(%arg0: i32, %arg1: memref<16x32xf32, #tpu.memory_space<vmem>>, %arg2: memref<32x256xf32, #tpu.memory_space<vmem>>, %arg3: memref<1x256xf32, #tpu.memory_space<vmem>>, %arg4: memref<256x128xf32, #tpu.memory_space<vmem>>, %arg5: memref<1x128xf32, #tpu.memory_space<vmem>>, %arg6: memref<128x10xf32, #tpu.memory_space<vmem>>, %arg7: memref<1x10xf32, #tpu.memory_space<vmem>>, %arg8: memref<16x10xf32, #tpu.memory_space<vmem>>) attributes {dimension_semantics = [#tpu.dimension_semantics<parallel>], iteration_bounds = array<i64: 1>, scalar_prefetch = 0 : i64, scratch_operands = 0 : i64, tpu.core_type = #tpu.core_type<tc>, window_params = [{transform_indices = @transform_0, window_bounds = array<i64: 16, 32>}, {pipeline_mode = #tpu.pipeline_mode<synchronous>, transform_indices = @transform_1, window_bounds = array<i64: 32, 256>}, {pipeline_mode = #tpu.pipeline_mode<synchronous>, transform_indices = @transform_2, window_bounds = array<i64: 1, 256>}, {pipeline_mode = #tpu.pipeline_mode<synchronous>, transform_indices = @transform_3, window_bounds = array<i64: 256, 128>}, {pipeline_mode = #tpu.pipeline_mode<synchronous>, transform_indices = @transform_4, window_bounds = array<i64: 1, 128>}, {pipeline_mode = #tpu.pipeline_mode<synchronous>, transform_indices = @transform_5, window_bounds = array<i64: 128, 10>}, {pipeline_mode = #tpu.pipeline_mode<synchronous>, transform_indices = @transform_6, window_bounds = array<i64: 1, 10>}, {transform_indices = @transform_7, window_bounds = array<i64: 16, 10>}]} {
    %c0 = arith.constant 0 : index
    %c0_0 = arith.constant 0 : index
    %0 = vector.load %arg2[%c0, %c0_0] : memref<32x256xf32, #tpu.memory_space<vmem>>, vector<32x256xf32>
    %c0_1 = arith.constant 0 : index
    %c0_2 = arith.constant 0 : index
    %1 = vector.load %arg1[%c0_1, %c0_2] : memref<16x32xf32, #tpu.memory_space<vmem>>, vector<16x32xf32>
    %cst = arith.constant dense<0.000000e+00> : vector<16x256xf32>
    %2 = tpu.matmul %1, %0, %cst {dimension_numbers = #tpu.dot_dimension_numbers<[1], [0], [0], [1], [0, 0, 1, 1], [], []>} : vector<16x32xf32>, vector<32x256xf32>, vector<16x256xf32> -> vector<16x256xf32>
    %c0_3 = arith.constant 0 : index
    %c0_4 = arith.constant 0 : index
    %3 = vector.load %arg3[%c0_3, %c0_4] : memref<1x256xf32, #tpu.memory_space<vmem>>, vector<1x256xf32>
    %4 = vector.broadcast %3 : vector<1x256xf32> to vector<16x256xf32>
    %5 = arith.addf %2, %4 : vector<16x256xf32>
    %cst_5 = arith.constant 5.000000e-01 : f32
    %6 = vector.broadcast %cst_5 : f32 to vector<16x256xf32>
    %7 = arith.mulf %6, %5 : vector<16x256xf32>
    %cst_6 = arith.constant 0.707106769 : f32
    %8 = vector.broadcast %cst_6 : f32 to vector<16x256xf32>
    %9 = arith.mulf %5, %8 : vector<16x256xf32>
    %10 = math.erf %9 : vector<16x256xf32>
    %cst_7 = arith.constant 1.000000e+00 : f32
    %11 = vector.broadcast %cst_7 : f32 to vector<16x256xf32>
    %12 = arith.addf %11, %10 : vector<16x256xf32>
    %13 = arith.mulf %7, %12 : vector<16x256xf32>
    %c0_8 = arith.constant 0 : index
    %c0_9 = arith.constant 0 : index
    %14 = vector.load %arg4[%c0_8, %c0_9] : memref<256x128xf32, #tpu.memory_space<vmem>>, vector<256x128xf32>
    %cst_10 = arith.constant dense<0.000000e+00> : vector<16x128xf32>
    %15 = tpu.matmul %13, %14, %cst_10 {dimension_numbers = #tpu.dot_dimension_numbers<[1], [0], [0], [1], [0, 0, 1, 1], [], []>} : vector<16x256xf32>, vector<256x128xf32>, vector<16x128xf32> -> vector<16x128xf32>
    %c0_11 = arith.constant 0 : index
    %c0_12 = arith.constant 0 : index
    %16 = vector.load %arg5[%c0_11, %c0_12] : memref<1x128xf32, #tpu.memory_space<vmem>>, vector<1x128xf32>
    %17 = vector.broadcast %16 : vector<1x128xf32> to vector<16x128xf32>
    %18 = arith.addf %15, %17 : vector<16x128xf32>
    %cst_13 = arith.constant 5.000000e-01 : f32
    %19 = vector.broadcast %cst_13 : f32 to vector<16x128xf32>
    %20 = arith.mulf %19, %18 : vector<16x128xf32>
    %cst_14 = arith.constant 0.707106769 : f32
    %21 = vector.broadcast %cst_14 : f32 to vector<16x128xf32>
    %22 = arith.mulf %18, %21 : vector<16x128xf32>
    %23 = math.erf %22 : vector<16x128xf32>
    %cst_15 = arith.constant 1.000000e+00 : f32
    %24 = vector.broadcast %cst_15 : f32 to vector<16x128xf32>
    %25 = arith.addf %24, %23 : vector<16x128xf32>
    %26 = arith.mulf %20, %25 : vector<16x128xf32>
    %c0_16 = arith.constant 0 : index
    %c0_17 = arith.constant 0 : index
    %27 = vector.load %arg6[%c0_16, %c0_17] : memref<128x10xf32, #tpu.memory_space<vmem>>, vector<128x10xf32>
    %cst_18 = arith.constant dense<0.000000e+00> : vector<16x10xf32>
    %28 = tpu.matmul %26, %27, %cst_18 {dimension_numbers = #tpu.dot_dimension_numbers<[1], [0], [0], [1], [0, 0, 1, 1], [], []>} : vector<16x128xf32>, vector<128x10xf32>, vector<16x10xf32> -> vector<16x10xf32>
    %c0_19 = arith.constant 0 : index
    %c0_20 = arith.constant 0 : index
    %29 = vector.load %arg7[%c0_19, %c0_20] : memref<1x10xf32, #tpu.memory_space<vmem>>, vector<1x10xf32>
    %30 = vector.broadcast %29 : vector<1x10xf32> to vector<16x10xf32>
    %31 = arith.addf %28, %30 : vector<16x10xf32>
    %c0_21 = arith.constant 0 : index
    %c0_22 = arith.constant 0 : index
    %32 = vector.load %arg8[%c0_21, %c0_22] : memref<16x10xf32, #tpu.memory_space<vmem>>, vector<16x10xf32>
    tpu.vector_store %arg8[%c0_21, %c0_22], %31 {strides = array<i32>} : memref<16x10xf32, #tpu.memory_space<vmem>>, vector<16x10xf32>,
    return
  }
  func.func @transform_0(%arg0: i32) -> (i32, i32) {
    %c0_i32 = arith.constant 0 : i32
    %c0_i32_0 = arith.constant 0 : i32
    return %arg0, %c0_i32 : i32, i32
  }
  func.func @transform_1(%arg0: i32) -> (i32, i32) {
    %c0_i32 = arith.constant 0 : i32
    %c0_i32_0 = arith.constant 0 : i32
    %c0_i32_1 = arith.constant 0 : i32
    return %c0_i32, %c0_i32_0 : i32, i32
  }
  func.func @transform_2(%arg0: i32) -> (i32, i32) {
    %c0_i32 = arith.constant 0 : i32
    %c0_i32_0 = arith.constant 0 : i32
    %c0_i32_1 = arith.constant 0 : i32
    return %c0_i32, %c0_i32_0 : i32, i32
  }
  func.func @transform_3(%arg0: i32) -> (i32, i32) {
    %c0_i32 = arith.constant 0 : i32
    %c0_i32_0 = arith.constant 0 : i32
    %c0_i32_1 = arith.constant 0 : i32
    return %c0_i32, %c0_i32_0 : i32, i32
  }
  func.func @transform_4(%arg0: i32) -> (i32, i32) {
    %c0_i32 = arith.constant 0 : i32
    %c0_i32_0 = arith.constant 0 : i32
    %c0_i32_1 = arith.constant 0 : i32
    return %c0_i32, %c0_i32_0 : i32, i32
  }
  func.func @transform_5(%arg0: i32) -> (i32, i32) {
    %c0_i32 = arith.constant 0 : i32
    %c0_i32_0 = arith.constant 0 : i32
    %c0_i32_1 = arith.constant 0 : i32
    return %c0_i32, %c0_i32_0 : i32, i32
  }
  func.func @transform_6(%arg0: i32) -> (i32, i32) {
    %c0_i32 = arith.constant 0 : i32
    %c0_i32_0 = arith.constant 0 : i32
    %c0_i32_1 = arith.constant 0 : i32
    return %c0_i32, %c0_i32_0 : i32, i32
  }
  func.func @transform_7(%arg0: i32) -> (i32, i32) {
    %c0_i32 = arith.constant 0 : i32
    %c0_i32_0 = arith.constant 0 : i32
    return %arg0, %c0_i32 : i32, i32
  }
}

</mosaic_0001>

<bundles_post_ra>
// kernel: music_classifier_forward.1
= control target key start
LH: loop header
LB: loop body
LE: loop exit
PB: predicated region body
PF: predicated region fallthrough
CT: control target
= control target key end

     0   :  { %12 = vsyncpa [#allocation3], 0  ;;  %s603_s24 = smov [#allocation2]   ;;  %s752_s0 = inlined_call_operand.vmem [shape: f32[16,32], index: 0, kind: input, shape index: {}]   ;;  %s753_s1 = inlined_call_operand.vmem [shape: f32[32,256], index: 1, kind: input, shape index: {}]   ;;  %s754_s2 = inlined_call_operand.vmem [shape: f32[1,256], index: 2, kind: input, shape index: {}]   ;;  %s755_s3 = inlined_call_operand.hbm [shape: f32[256,128], index: 3, kind: input, shape index: {}]   ;;  %s756_s4 = inlined_call_operand.vmem [shape: f32[1,128], index: 4, kind: input, shape index: {}]   ;;  %s757_s5 = inlined_call_operand.vmem [shape: f32[128,10], index: 5, kind: input, shape index: {}]   ;;  %s758_s6 = inlined_call_operand.vmem [shape: f32[1,10], index: 6, kind: input, shape index: {}]   ;;  %s759_s7 = inlined_call_operand.vmem [shape: f32[16,10], index: 7, kind: output, shape index: {}]  }
   0x1   :  { %s24_s25 = sshll.u32 %s603_s24, 4  ;;  %s579_s28 = scalar_lea.hbm %s755_s3, 4096  ;;  %s25_s25 = int_to_ptr.vmem [resolvable:$true] %s24_s25 }
   0x2   :  { %p580_p0 = scmp.ne.s32.totalorder %s755_s3, %s579_s28  ;;  %p583_p1 = scmp.lt.u32.totalorder %s579_s28, %s755_s3 }
   0x4   :  { %p585_p2 = pnand %p583_p1, %p580_p0 }
   0x6   :  { %588 = shalt.err (!%p585_p2)
}
   0x7   :  { %s589_s10 = scalar_lea.vmem %s25_s25, 4096  ;;  %p594_p4 = scmp.lt.s32.totalorder %s25_s25, %s25_s25 }
   0x8   :  { %p590_p3 = scmp.ne.s32.totalorder %s25_s25, %s589_s10  ;;  %p595_p5 = scmp.lt.s32.totalorder %s589_s10, %s589_s10 }
   0xa   :  { %p596_p6 = por %p595_p5, %p594_p4 }
   0xc   :  { %p597_p7 = pnand %p596_p6, %p590_p3 }
   0xe   :  { %600 = shalt.err (!%p597_p7)
}
   0xf   :  { %s604_s11 = smov 128   ;;  %s605_s12 = smov 8  }
  0x10   :  { %30 = dma.hbm_to_vmem [thread:$0]  %s755_s3, 4096, %s25_s25, [#allocation3], %s604_s11, %s604_s11, %s605_s12  }
  0x11   :  { %601 = dma.done.wait [#allocation3], 4096  }
  0x12   :  { %602 = vsyncadd [#allocation3], 4294963200  ;;  %v606_v0 = vmov 0.0   ;;  %v41_v1 = vld [vmem:[%s753_s1 + $0x8] sm:$0xff]  ;;  %v43_v2 = vld [vmem:[%s753_s1 + $0x18] sm:$0xff]  ;;  %vm62_vm0 = vcmask 261120  }
  0x13   :  { %133 = vmatprep.mubr.f32.mxu0 %v606_v0  ;;  %v40_v3 = vld [vmem:[%s753_s1] sm:$0xff]  ;;  %v491_v4 = vpack.c.bf16 %v43_v2, %v41_v1  ;;  %v42_v5 = vld [vmem:[%s753_s1 + $0x10] sm:$0xff]  ;;  %v45_v6 = vld [vmem:[%s753_s1 + $0x28] sm:$0xff]  ;;  %vm388_vm1 = vcmask 80896  }
  0x14   :  { %v47_v7 = vld [vmem:[%s753_s1 + $0x38] sm:$0xff]  ;;  %v493_v8 = vpack.c.bf16 %v42_v5, %v40_v3  ;;  %v44_v10 = vld [vmem:[%s753_s1 + $0x20] sm:$0xff]  ;;  %v46_v11 = vld [vmem:[%s753_s1 + $0x30] sm:$0xff]  ;;  %v52_v5 = vlaneseq }
  0x15   :  { %v495_v9 = vpack.c.bf16 %v47_v7, %v45_v6  ;;  %492 = vmatprep.subr.bf16.mxu0 %v491_v4  ;;  %v182_v12 = vld [vmem:[#allocation2 + $0x80] sm:$0xff]  ;;  %v183_v13 = vld [vmem:[#allocation2 + $0x88] sm:$0xff]  ;;  %v497_v14 = vpack.c.bf16 %v46_v11, %v44_v10  ;;  %v184_v18 = vld [vmem:[#allocation2 + $0x90] sm:$0xff] }
  0x16   :  { %494 = vmatpush1.bf16.msra.mxu0 %v493_v8  ;;  %v499_v15 = vpack.c.bf16 %v183_v13, %v182_v12  ;;  %v166_v16 = vld [vmem:[#allocation2] sm:$0xff]  ;;  %v167_v17 = vld [vmem:[#allocation2 + $0x8] sm:$0xff]  ;;  %v185_v20 = vld [vmem:[#allocation2 + $0x98] sm:$0xff]  ;;  %v53_v6 = vshrl.u32 %v52_v5, 7 }
  0x17   :  { %496 = vmatprep.subr.bf16.mxu0 %v495_v9  ;;  %v501_v19 = vpack.c.bf16 %v167_v17, %v166_v16  ;;  %v168_v21 = vld [vmem:[#allocation2 + $0x10] sm:$0xff]  ;;  %v169_v22 = vld [vmem:[#allocation2 + $0x18] sm:$0xff]  ;;  %v503_v23 = vpack.c.bf16 %v185_v20, %v184_v18  ;;  %v186_v24 = vld [vmem:[#allocation2 + $0xa0] sm:$0xff] }
  0x18   :  { %500 = vmatprep.subr.bf16.mxu1 %v499_v15  ;;  %v187_v25 = vld [vmem:[#allocation2 + $0xa8] sm:$0xff]  ;;  %v505_v26 = vpack.c.bf16 %v169_v22, %v168_v21  ;;  %v48_v27 = vld [vmem:[%s752_s0] sm:$0xff]  ;;  %v170_v29 = vld [vmem:[#allocation2 + $0x20] sm:$0xff]  ;;  %v54_v7 = vsub.s32 0, %v53_v6  ;;  %v58_v9 = vsub.s32 1, %v53_v6 }
  0x19   :  { %502 = vmatpush3.bf16.msra.mxu1 %v501_v19  ;;  %v507_v28 = vpack.c.bf16 %v187_v25, %v186_v24  ;;  %v171_v30 = vld [vmem:[#allocation2 + $0x28] sm:$0xff]  ;;  %v49_v32 = vld [vmem:[%s752_s0 + $0x8] sm:$0xff]  ;;  %v188_v33 = vld [vmem:[#allocation2 + $0xb0] sm:$0xff] }
  0x1a   :  { %498 = vmatpush1.bf16.msra.mxu0 %v497_v14  ;;  %504 = vmatprep.subr.bf16.mxu1 %v503_v23  ;;  %v509_v31 = vpack.c.bf16 %v171_v30, %v170_v29  ;;  %v189_v34 = vld [vmem:[#allocation2 + $0xb8] sm:$0xff]  ;;  %v172_v36 = vld [vmem:[#allocation2 + $0x30] sm:$0xff]  ;;  %v190_v39 = vld [vmem:[#allocation2 + $0xc0] sm:$0xff] }
  0x1b   :  { %v511_v35 = vpack.c.bf16 %v189_v34, %v188_v33  ;;  %v173_v37 = vld [vmem:[#allocation2 + $0x38] sm:$0xff]  ;;  %v191_v40 = vld [vmem:[#allocation2 + $0xc8] sm:$0xff]  ;;  %v174_v42 = vld [vmem:[#allocation2 + $0x40] sm:$0xff] }
  0x1c   :  { %v513_v38 = vpack.c.bf16 %v173_v37, %v172_v36  ;;  %v515_v41 = vpack.c.bf16 %v191_v40, %v190_v39  ;;  %v175_v43 = vld [vmem:[#allocation2 + $0x48] sm:$0xff]  ;;  %v192_v45 = vld [vmem:[#allocation2 + $0xd0] sm:$0xff]  ;;  %v193_v46 = vld [vmem:[#allocation2 + $0xd8] sm:$0xff] }
  0x1d   :  { %396 = vmatmul.mubr.msk.f32.vlgmr.msra.gmra.mrb[0].mxu0 %vm62_vm0, %v48_v27  ;;  %506 = vmatpush3.bf16.msra.mxu1 %v505_v26  ;;  %v517_v44 = vpack.c.bf16 %v175_v43, %v174_v42  ;;  %v519_v47 = vpack.c.bf16 %v193_v46, %v192_v45  ;;  %v176_v48 = vld [vmem:[#allocation2 + $0x50] sm:$0xff]  ;;  %v177_v49 = vld [vmem:[#allocation2 + $0x58] sm:$0xff]  ;;  %v194_v51 = vld [vmem:[#allocation2 + $0xe0] sm:$0xff] }
  0x1e   :  { %139 = vmatprep.mubr.f32.mxu0 %v606_v0  ;;  %508 = vmatprep.subr.bf16.mxu1 %v507_v28  ;;  %v521_v50 = vpack.c.bf16 %v177_v49, %v176_v48  ;;  %v195_v52 = vld [vmem:[#allocation2 + $0xe8] sm:$0xff]  ;;  %v178_v54 = vld [vmem:[#allocation2 + $0x60] sm:$0xff]  ;;  %v196_v57 = vld [vmem:[#allocation2 + $0xf0] sm:$0xff] }
  0x1f   :  { %v523_v53 = vpack.c.bf16 %v195_v52, %v194_v51  ;;  %v179_v55 = vld [vmem:[#allocation2 + $0x68] sm:$0xff]  ;;  %v197_v58 = vld [vmem:[#allocation2 + $0xf8] sm:$0xff]  ;;  %v180_v60 = vld [vmem:[#allocation2 + $0x70] sm:$0xff] }
  0x20   :  { %v525_v56 = vpack.c.bf16 %v179_v55, %v178_v54  ;;  %v527_v59 = vpack.c.bf16 %v197_v58, %v196_v57  ;;  %v181_v61 = vld [vmem:[#allocation2 + $0x78] sm:$0xff]  ;;  %v290_v63 = vld [vmem:[%s757_s5] sm:$0xff]  ;;  %v292_v1 = vld [vmem:[%s757_s5 + $0x10] sm:$0xff] }
  0x21   :  { %397 = vmatmul.mubr.msk.f32.gmra.mrb[2].mxu0 %vm62_vm0, %v49_v32  ;;  %510 = vmatpush3.bf16.msra.mxu1 %v509_v31  ;;  %v529_v62 = vpack.c.bf16 %v181_v61, %v180_v60  ;;  %v291_v0 = vld [vmem:[%s757_s5 + $0x8] sm:$0xff]  ;;  %v293_v3 = vld [vmem:[%s757_s5 + $0x18] sm:$0xff]  ;;  %v50_v8 = vld [vmem:[%s754_s2] sm:$0x3] }
  0x22   :  { %512 = vmatprep.subr.bf16.mxu1 %v511_v35  ;;  %v531_v2 = vpack.c.bf16 %v291_v0, %v290_v63  ;;  %v535_v4 = vpack.c.bf16 %v293_v3, %v292_v1  ;;  %v55_v10 = vrot.slane %v50_v8, %v54_v7  ;;  %v59_v11 = vrot.slane %v50_v8, %v58_v9  ;;  %v294_v40 = vld [vmem:[%s757_s5 + $0x20] sm:$0xff]  ;;  %v296_v43 = vld [vmem:[%s757_s5 + $0x30] sm:$0xff] }
  0x23   :  { %v298_v46 = vld [vmem:[%s757_s5 + $0x40] sm:$0xff]  ;;  %v300_v49 = vld [vmem:[%s757_s5 + $0x50] sm:$0xff] }
  0x24   :  { %532 = vmatprep.subr.bf16.mxu0 %v531_v2  ;;  %v302_v52 = vld [vmem:[%s757_s5 + $0x60] sm:$0xff]  ;;  %v304_v55 = vld [vmem:[%s757_s5 + $0x70] sm:$0xff] }
  0x25   :  { %514 = vmatpush3.bf16.msra.mxu1 %v513_v38  ;;  %534 = vmatpush3.bf16.msra.mxu0 %v531_v2 }
  0x26   :  { %516 = vmatprep.subr.bf16.mxu1 %v515_v41  ;;  %536 = vmatprep.subr.bf16.mxu0 %v535_v4  ;;  %v295_v41 = vld [vmem:[%s757_s5 + $0x28] sm:$0xff] }
  0x27   :  { %v539_v42 = vpack.c.bf16 %v295_v41, %v294_v40 }
  0x29   :  { %518 = vmatpush3.bf16.msra.mxu1 %v517_v44  ;;  %538 = vmatpush3.bf16.msra.mxu0 %v535_v4  ;;  %v297_v44 = vld [vmem:[%s757_s5 + $0x38] sm:$0xff] }
  0x2a   :  { %520 = vmatprep.subr.bf16.mxu1 %v519_v47  ;;  %540 = vmatprep.subr.bf16.mxu0 %v539_v42  ;;  %v543_v45 = vpack.c.bf16 %v297_v44, %v296_v43  ;;  %v299_v47 = vld [vmem:[%s757_s5 + $0x48] sm:$0xff] }
  0x2b   :  { %v547_v48 = vpack.c.bf16 %v299_v47, %v298_v46 }
  0x2d   :  { %522 = vmatpush3.bf16.msra.mxu1 %v521_v50  ;;  %542 = vmatpush3.bf16.msra.mxu0 %v539_v42  ;;  %v301_v50 = vld [vmem:[%s757_s5 + $0x58] sm:$0xff] }
  0x2e   :  { %524 = vmatprep.subr.bf16.mxu1 %v523_v53  ;;  %544 = vmatprep.subr.bf16.mxu0 %v543_v45  ;;  %v551_v51 = vpack.c.bf16 %v301_v50, %v300_v49  ;;  %v303_v53 = vld [vmem:[%s757_s5 + $0x68] sm:$0xff] }
  0x2f   :  { %v555_v54 = vpack.c.bf16 %v303_v53, %v302_v52 }
  0x31   :  { %526 = vmatpush3.bf16.msra.mxu1 %v525_v56  ;;  %546 = vmatpush3.bf16.msra.mxu0 %v543_v45  ;;  %v305_v56 = vld [vmem:[%s757_s5 + $0x78] sm:$0xff] }
  0x32   :  { %528 = vmatprep.subr.bf16.mxu1 %v527_v59  ;;  %548 = vmatprep.subr.bf16.mxu0 %v547_v48  ;;  %v559_v57 = vpack.c.bf16 %v305_v56, %v304_v55  ;;  %v398_v59 = vld [vmem:[%s756_s4] ss:$0 sm:$0xff] }
  0x35   :  { %530 = vmatpush3.bf16.msra.mxu1 %v529_v62  ;;  %550 = vmatpush3.bf16.msra.mxu0 %v547_v48 }
  0x36   :  { %552 = vmatprep.subr.bf16.mxu0 %v551_v51 }
  0x39   :  { %554 = vmatpush3.bf16.msra.mxu0 %v551_v51 }
  0x3a   :  { %556 = vmatprep.subr.bf16.mxu0 %v555_v54 }
  0x3d   :  { %558 = vmatpush3.bf16.msra.mxu0 %v555_v54 }
  0x3e   :  { %560 = vmatprep.subr.bf16.mxu0 %v559_v57 }
  0x41   :  { %562 = vmatpush3.bf16.msra.mxu0 %v559_v57 }
  0xf0   :  { %v135_v12 = vpop.f32.mrb[0].mxu0 }
  0xf1   :  { %v136_v13 = vadd.f32 %v135_v12, %v55_v10  ;;  %v137_v14 = vpop.f32.mrb[1].mxu0 }
  0xf2   :  { %v138_v15 = vadd.f32 %v137_v14, %v59_v11 }
  0xf3   :  { %v150_v16 = vmul.f32 0.70710677, %v136_v13  ;;  %v146_v29 = vmul.f32 0.5, %v136_v13  ;;  %v399_v13 = vld [vmem:[%s758_s6] ss:$0 sm:$0xff] }
  0xf4   :  { %v151_v17 = vmul.f32 0.70710677, %v138_v15  ;;  %v141_v18 = vpop.f32.mrb[2].mxu0  ;;  %v147_v27 = vmul.f32 0.5, %v138_v15 }
  0xf5   :  { %567 = verf.f32 %v150_v16  ;;  %v142_v19 = vadd.f32 %v141_v18, %v55_v10  ;;  %v143_v20 = vpop.f32.mrb[3].mxu0 }
  0xf6   :  { %569 = verf.f32 %v151_v17  ;;  %v144_v21 = vadd.f32 %v143_v20, %v59_v11 }
  0xf7   :  { %v152_v22 = vmul.f32 0.70710677, %v142_v19  ;;  %v148_v37 = vmul.f32 0.5, %v142_v19 }
  0xf8   :  { %v153_v23 = vmul.f32 0.70710677, %v144_v21  ;;  %v149_v35 = vmul.f32 0.5, %v144_v21 }
  0xf9   :  { %571 = verf.f32 %v152_v22 }
  0xfa   :  { %573 = verf.f32 %v153_v23 }
  0xff   :  { %v568_v24 = vpop.eup %567 }
 0x100   :  { %v570_v25 = vpop.eup %569  ;;  %v158_v26 = vadd.f32 1.0, %v568_v24 }
 0x101   :  { %v159_v28 = vadd.f32 1.0, %v570_v25 }
 0x102   :  { %v162_v34 = vmul.f32 %v158_v26, %v146_v29 }
 0x103   :  { %v572_v30 = vpop.eup %571  ;;  %v163_v31 = vmul.f32 %v159_v28, %v147_v27 }
 0x104   :  { %v574_v32 = vpop.eup %573  ;;  %v160_v33 = vadd.f32 1.0, %v572_v30 }
 0x105   :  { %v161_v36 = vadd.f32 1.0, %v574_v32  ;;  %269 = vmatprep.mubr.f32.mxu1 %v163_v31 }
 0x106   :  { %270 = vmatmul.mubr.f32.vlgmr.msra.gmra.mrb[0].mxu1 %v162_v34  ;;  %v164_v39 = vmul.f32 %v160_v33, %v148_v37 }
 0x107   :  { %v165_v38 = vmul.f32 %v161_v36, %v149_v35 }
 0x109   :  { %274 = vmatprep.mubr.f32.mxu1 %v165_v38 }
 0x10a   :  { %275 = vmatmul.mubr.f32.gmra.mrb[2].mxu1 %v164_v39 }
 0x1d9   :  { %v432_v58 = vpop.f32.mrb[0].mxu1 }
 0x1da   :  { %v433_v60 = vpop.f32.mrb[1].mxu1 }
 0x1db   :  { %v434_v61 = vadd.f32 %v433_v60, %v432_v58 }
 0x1dd   :  { %v272_v62 = vadd.f32 %v434_v61, %v398_v59  ;;  %v435_v63 = vpop.f32.mrb[2].mxu1 }
 0x1de   :  { %v436_v0 = vpop.f32.mrb[3].mxu1 }
 0x1df   :  { %v282_v1 = vmul.f32 0.70710677, %v272_v62  ;;  %v437_v2 = vadd.f32 %v436_v0, %v435_v63  ;;  %v280_v6 = vmul.f32 0.5, %v272_v62 }
 0x1e1   :  { %575 = verf.f32 %v282_v1  ;;  %v277_v3 = vadd.f32 %v437_v2, %v398_v59 }
 0x1e3   :  { %v283_v4 = vmul.f32 0.70710677, %v277_v3  ;;  %v281_v10 = vmul.f32 0.5, %v277_v3 }
 0x1e5   :  { %577 = verf.f32 %v283_v4 }
 0x1eb   :  { %v576_v5 = vpop.eup %575 }
 0x1ec   :  { %v286_v7 = vadd.f32 1.0, %v576_v5 }
 0x1ee   :  { %v288_v8 = vmul.f32 %v286_v7, %v280_v6 }
 0x1ef   :  { %v578_v9 = vpop.eup %577 }
 0x1f0   :  { %v287_v11 = vadd.f32 1.0, %v578_v9  ;;  %488 = vmatprep.mubr.f32.mxu0 %v288_v8 }
 0x1f2   :  { %v289_v12 = vmul.f32 %v287_v11, %v281_v10 }
 0x1f4   :  { %489 = vmatmul.mubr.f32.vlgmr.msra.gmra.mrb[4].mxu0 %v289_v12 }
 0x2c7   :  { %v490_v14 = vpop.f32.mrb[4].mxu0 }
 0x2c8   :  { %v385_v15 = vadd.f32 %v490_v14, %v399_v13  ;;  %v379_v16 = vpop.f32.mrb[5].mxu0 }
 0x2c9   :  { %v380_v17 = vadd.f32 %v399_v13, %v379_v16 }
 0x2ca   :  { %390 = vst.msk [vmem:[%s759_s7 + $0x8] sm:$0xff] %vm388_vm1, %v385_v15 }
 0x2cb   :  { %389 = vst.msk [vmem:[%s759_s7] sm:$0xff] %vm388_vm1, %v380_v17 }
 0x2cc   :  { %395 = vsyncpa [#allocation3], 1 }

</bundles_post_ra>
